<compile_context>
chip_gen: v7x
topology: tpu7x:2x2x1
jax: 0.10.0
libtpu: 0.0.40
codegen_flags: <defaults>
</compile_context>

<pallas_src>
import functools

import numpy as np
import jax
import jax.numpy as jnp
from jax.experimental import pallas as pl
from jax.experimental.pallas import tpu as pltpu

LRELU_ALPHA = 0.2       # LeakyReLU negative slope (the "alpha" ctor arg)
_NEG_BIG = -1e30        # finite stand-in for -inf in the running max


def _round_up(v, m):
    return (v + m - 1) // m * m


def _pick_block(limit, n, candidates):
    """Largest candidate <= limit that divides n."""
    for c in sorted(set(candidates), reverse=True):
        if c <= limit and n % c == 0:
            return c
    return min(limit, n)


# --------------------------------------------------------------------------- #
# Kernel 1: projection.  h = x @ W,  f_l = h . a_l  (N,1),  f_r = a_r . h  (1,N)
# --------------------------------------------------------------------------- #
def _project_kernel(x_ref, w_ref, al_ref, ar_ref, h_ref, fl_ref, fr_ref):
    h = jnp.dot(x_ref[...], w_ref[...], preferred_element_type=jnp.float32)
    h_ref[...] = h.astype(h_ref.dtype)           # optionally bf16 for the MXU stream
    # f_l: VPU multiply + lane reduce -> natural (bq, 1) layout.
    fl_ref[...] = jnp.sum(h * al_ref[...], axis=-1, keepdims=True)
    # f_r emitted lane-major (1, bq): the attention hot loop only broadcasts it
    # across sublanes (no transpose / matvec in the O(N^2) inner loop).
    fr_ref[...] = jax.lax.dot_general(
        ar_ref[...], h, (((1,), (1,)), ((), ())),
        preferred_element_type=jnp.float32)


# --------------------------------------------------------------------------- #
# Kernel 2: tiled masked attention with online-max, rowsum and e@h accumulators.
# --------------------------------------------------------------------------- #
def _attn_kernel(adj_ref, h_ref, fl_ref, fr_ref, out_ref,
                 acc_ref, rs_ref, m_ref, *, alpha, concat, block_k, h_resident):
    j = pl.program_id(1)

    @pl.when(j == 0)
    def _():
        acc_ref[...] = jnp.zeros_like(acc_ref)
        rs_ref[...] = jnp.zeros_like(rs_ref)
        m_ref[...] = jnp.full_like(m_ref, _NEG_BIG)

    if h_resident:
        # h is fully resident in VMEM (copied once); slice the key tile in place.
        start = pl.multiple_of(j * block_k, block_k)
        hk = h_ref[pl.ds(start, block_k), :]
    else:
        hk = h_ref[...]                            # streamed (bk, Fp) key tile

    # Logits z = -leakyrelu(a_l.h_i + a_r.h_j); non-edges get a big negative.
    s = fl_ref[...] + fr_ref[...]                  # (bq,1)+(1,bk) -> (bq,bk)
    z = s * jnp.where(s > 0, -1.0, -alpha)         # = -leakyrelu(s)
    z = jnp.where(adj_ref[...] != 0, z, _NEG_BIG)  # any nonzero adj counts as an edge

    # Online-max stabilization (cancels exactly in acc/rowsum); z - m_new <= 0
    # everywhere so exp never overflows, and masked lanes underflow to 0 once the
    # row has seen a real edge (rows that never do are padding / would-be-NaN rows).
    m_new = jnp.maximum(m_ref[...], jnp.max(z, axis=-1, keepdims=True))
    scale = jnp.exp(m_ref[...] - m_new)            # (bq, 1), <= 1
    p = jnp.exp(z - m_new)                         # (bq, bk), in [0, 1]

    rs_ref[...] = scale * rs_ref[...] + jnp.sum(p, axis=-1, keepdims=True)
    acc_ref[...] = scale * acc_ref[...] + jnp.dot(
        p.astype(hk.dtype), hk, preferred_element_type=jnp.float32)
    m_ref[...] = m_new

    @pl.when(j == pl.num_programs(1) - 1)
    def _():
        rs = rs_ref[...]
        # rs == 0 cannot happen (padded rows sum the contamination); guard anyway.
        inv = pl.reciprocal(jnp.where(rs > 0, rs, 1.0), approx=False)
        hp = acc_ref[...] * inv
        if concat:
            hp = jnp.where(hp > 0, hp, jnp.expm1(hp))   # F.elu
        out_ref[...] = hp


# --------------------------------------------------------------------------- #
# Wrapper
# --------------------------------------------------------------------------- #
def sp_graph_attention(x, adj, W, a, *, alpha=LRELU_ALPHA, concat=True,
                       block_q=1024, block_k=512, mxu_bf16=False):
    """Pallas TPU implementation of SpGraphAttentionLayer.forward (eval mode)."""
    N, Fin = x.shape
    Fout = W.shape[1]

    Fp = _round_up(Fout, 128)          # lane-dense compute / output width
    Np = _round_up(N, 128)             # padded node count for (8,128) tiling

    h_dtype = jnp.bfloat16 if mxu_bf16 else jnp.float32
    h_elem = 2 if mxu_bf16 else 4

    # ---- tile selection ------------------------------------------------------
    # Key tile: 512 default (>= 512 needed to approach the HBM roofline), >= 128.
    bk = _pick_block(max(min(block_k, Np), 128), Np, (1024, 512, 256, 128))
    # Query tile: large to amortize grid overhead / h re-reads, but capped at Np//2
    # so the "parallel" row axis always has >= 2 tiles (v7x megacore utilization).
    bq = _pick_block(min(block_q, max(Np // 2, 8)), Np,
                     (2048, 1024, 512, 256, 128, 64, 32, 16, 8))
    # Projection row tile (independent; >= 128 keeps the (1, bq_p) f_r block legal).
    bq_p = _pick_block(Np, Np, (512, 256, 128))

    # Keep h fully resident in VMEM when it fits a conservative budget (kills the
    # per-row-tile h re-stream from HBM, the dominant bandwidth cost); otherwise
    # stream (bk, Fp) key tiles and rely on the large bq to amortize re-reads.
    h_resident = (2 * Np * Fp * h_elem) <= (12 << 20)

    # ---- pad parameters / features (zeros are inert in every downstream op) ---
    x_p = x if Np == N else jnp.pad(x, ((0, Np - N), (0, 0)))
    W_p = W if Fp == Fout else jnp.pad(W, ((0, 0), (0, Fp - Fout)))
    a_l = a[:, :Fout]
    a_r = a[:, Fout:]
    if Fp != Fout:
        a_l = jnp.pad(a_l, ((0, 0), (0, Fp - Fout)))
        a_r = jnp.pad(a_r, ((0, 0), (0, Fp - Fout)))

    # Adjacency as int8 (only O(N^2) HBM stream). Any nonzero value counts as an
    # edge (mask is rebuilt from `!= 0` in-kernel, matching the reference).
    if adj.dtype == jnp.int8:
        adj_i8 = adj
    elif adj.dtype == jnp.bool_:
        adj_i8 = adj.astype(jnp.int8)
    else:
        adj_i8 = (adj != 0).astype(jnp.int8)
    if Np != N:
        adj_i8 = jnp.pad(adj_i8, ((0, Np - N), (0, Np - N)))

    # ---- kernel 1: h, f_l, f_r ------------------------------------------------
    h, fl, fr = pl.pallas_call(
        _project_kernel,
        out_shape=(jax.ShapeDtypeStruct((Np, Fp), h_dtype),
                   jax.ShapeDtypeStruct((Np, 1), jnp.float32),
                   jax.ShapeDtypeStruct((1, Np), jnp.float32)),
        grid=(Np // bq_p,),
        in_specs=[
            pl.BlockSpec((bq_p, Fin), lambda i: (i, 0)),
            pl.BlockSpec((Fin, Fp), lambda i: (0, 0)),   # resident
            pl.BlockSpec((1, Fp), lambda i: (0, 0)),     # resident
            pl.BlockSpec((1, Fp), lambda i: (0, 0)),     # resident
        ],
        out_specs=(pl.BlockSpec((bq_p, Fp), lambda i: (i, 0)),
                   pl.BlockSpec((bq_p, 1), lambda i: (i, 0)),
                   pl.BlockSpec((1, bq_p), lambda i: (0, i))),
        compiler_params=pltpu.CompilerParams(dimension_semantics=("parallel",)),
    )(x_p, W_p, a_l, a_r)

    # ---- kernel 2: tiled masked attention --------------------------------------
    if h_resident:
        h_spec = pl.BlockSpec((Np, Fp), lambda i, j: (0, 0))   # copied once, reused
    else:
        h_spec = pl.BlockSpec((bk, Fp), lambda i, j: (j, 0))   # streamed per key tile

    # Per-step VMEM estimate (double-buffered streams + scratch + live temporaries),
    # used to raise the scoped limit; clamped so it is legal on v5e/v6e/v7x.
    vmem_est = (
        2 * bq * bk                                            # adj int8
        + (2 * Np * Fp * h_elem if h_resident else 2 * bk * Fp * h_elem)
        + 2 * bq * Fp * 4                                      # out
        + bq * Fp * 4 + 2 * bq * 4                             # acc / rowsum / max
        + 4 * bq * bk * 4                                      # (bq,bk) f32 temporaries
        + 2 * (bq + bk) * 4                                    # f_l / f_r
    )
    vmem_limit = int(min(max(vmem_est * 5 // 4, 32 << 20), 64 << 20))

    kernel = functools.partial(_attn_kernel, alpha=alpha, concat=concat,
                               block_k=bk, h_resident=h_resident)
    out = pl.pallas_call(
        kernel,
        out_shape=jax.ShapeDtypeStruct((Np, Fp), jnp.float32),
        grid=(Np // bq, Np // bk),
        in_specs=[
            pl.BlockSpec((bq, bk), lambda i, j: (i, j)),   # adj mask (int8)
            h_spec,                                        # h (key side)
            pl.BlockSpec((bq, 1), lambda i, j: (i, 0)),    # f_l (resident along j)
            pl.BlockSpec((1, bk), lambda i, j: (0, j)),    # f_r
        ],
        out_specs=pl.BlockSpec((bq, Fp), lambda i, j: (i, 0)),
        scratch_shapes=[
            pltpu.VMEM((bq, Fp), jnp.float32),   # acc = sum e @ h
            pltpu.VMEM((bq, 1), jnp.float32),    # rowsum
            pltpu.VMEM((bq, 1), jnp.float32),    # running max
        ],
        compiler_params=pltpu.CompilerParams(
            dimension_semantics=("parallel", "arbitrary"),
            vmem_limit_bytes=vmem_limit),
    )(adj_i8, h, fl, fr)

    return out[:N, :Fout]


# --------------------------------------------------------------------------- #
# Pure-JAX dense reference matching the PyTorch sparse forward (eval mode).
# --------------------------------------------------------------------------- #
def _reference(x, adj, W, a, *, alpha=LRELU_ALPHA, concat=True):
    Fout = W.shape[1]
    h = x @ W
    f_l = h @ a[:, :Fout].T              # (N, 1)
    f_r = h @ a[:, Fout:].T              # (N, 1)
    s = f_l + f_r.T                      # (N, N)
    e = jnp.exp(-jnp.where(s > 0, s, alpha * s))
    e = jnp.where(adj != 0, e, 0.0)
    rowsum = e.sum(axis=-1, keepdims=True)
    hp = (e @ h) / rowsum
    return jnp.where(hp > 0, hp, jnp.expm1(hp)) if concat else hp


if __name__ == "__main__":
    key = jax.random.PRNGKey(0)
    N, Fin, Fout = 64, 16, 32

    k1, k2, k3, k4 = jax.random.split(key, 4)
    x = jax.random.normal(k1, (N, Fin), dtype=jnp.float32)

    # Random sparse-ish adjacency with self-loops (so e_rowsum > 0 everywhere,
    # matching the non-nan asserts in the PyTorch module).  Shipped as int8.
    adj = ((jax.random.uniform(k2, (N, N)) < 0.2)
           | jnp.eye(N, dtype=bool)).astype(jnp.int8)

    # Deterministic xavier_normal_ init (gain=1.414), matching parameter shapes.
    std_W = 1.414 * np.sqrt(2.0 / (Fin + Fout))
    W = (std_W * jax.random.normal(k3, (Fin, Fout))).astype(jnp.float32)
    std_a = 1.414 * np.sqrt(2.0 / (1 + 2 * Fout))
    a = (std_a * jax.random.normal(k4, (1, 2 * Fout))).astype(jnp.float32)

    out = sp_graph_attention(x, adj, W, a)
    out = jax.block_until_ready(out)

    ref = _reference(x, adj, W, a)
    np.testing.assert_allclose(np.asarray(out), np.asarray(ref), rtol=2e-4, atol=2e-4)
    print("KERNEL_OK")
</pallas_src>

<mosaic_0001>
module attributes {stable_mosaic.version = 11 : i64} {
  func.func @_project_kernel(%arg0: i32, %arg1: memref<128x16xf32, #tpu.memory_space<vmem>>, %arg2: memref<16x128xf32, #tpu.memory_space<vmem>>, %arg3: memref<1x128xf32, #tpu.memory_space<vmem>>, %arg4: memref<1x128xf32, #tpu.memory_space<vmem>>, %arg5: memref<128x128xf32, #tpu.memory_space<vmem>>, %arg6: memref<128x1xf32, #tpu.memory_space<vmem>>, %arg7: memref<1x128xf32, #tpu.memory_space<vmem>>) attributes {dimension_semantics = [#tpu.dimension_semantics<parallel>], iteration_bounds = array<i64: 1>, scalar_prefetch = 0 : i64, scratch_operands = 0 : i64, tpu.core_type = #tpu.core_type<tc>, window_params = [{transform_indices = @transform_0, window_bounds = array<i64: 128, 16>}, {pipeline_mode = #tpu.pipeline_mode<synchronous>, transform_indices = @transform_1, window_bounds = array<i64: 16, 128>}, {pipeline_mode = #tpu.pipeline_mode<synchronous>, transform_indices = @transform_2, window_bounds = array<i64: 1, 128>}, {pipeline_mode = #tpu.pipeline_mode<synchronous>, transform_indices = @transform_3, window_bounds = array<i64: 1, 128>}, {transform_indices = @transform_4, window_bounds = array<i64: 128, 128>}, {transform_indices = @transform_5, window_bounds = array<i64: 128, 1>}, {transform_indices = @transform_6, window_bounds = array<i64: 1, 128>}]} {
    %c0 = arith.constant 0 : index
    %c0_0 = arith.constant 0 : index
    %0 = vector.load %arg1[%c0, %c0_0] : memref<128x16xf32, #tpu.memory_space<vmem>>, vector<128x16xf32>
    %c0_1 = arith.constant 0 : index
    %c0_2 = arith.constant 0 : index
    %1 = vector.load %arg2[%c0_1, %c0_2] : memref<16x128xf32, #tpu.memory_space<vmem>>, vector<16x128xf32>
    %cst = arith.constant dense<0.000000e+00> : vector<128x128xf32>
    %2 = tpu.matmul %0, %1, %cst {dimension_numbers = #tpu.dot_dimension_numbers<[1], [0], [0], [1], [0, 0, 1, 1], [], []>} : vector<128x16xf32>, vector<16x128xf32>, vector<128x128xf32> -> vector<128x128xf32>
    %c0_3 = arith.constant 0 : index
    %c0_4 = arith.constant 0 : index
    %3 = vector.load %arg5[%c0_3, %c0_4] : memref<128x128xf32, #tpu.memory_space<vmem>>, vector<128x128xf32>
    tpu.vector_store %arg5[%c0_3, %c0_4], %2 {strides = array<i32>} : memref<128x128xf32, #tpu.memory_space<vmem>>, vector<128x128xf32>,
    %c0_5 = arith.constant 0 : index
    %c0_6 = arith.constant 0 : index
    %4 = vector.load %arg3[%c0_5, %c0_6] : memref<1x128xf32, #tpu.memory_space<vmem>>, vector<1x128xf32>
    %5 = vector.broadcast %4 : vector<1x128xf32> to vector<128x128xf32>
    %6 = arith.mulf %2, %5 : vector<128x128xf32>
    %cst_7 = arith.constant dense<0.000000e+00> : vector<128xf32>
    %7 = vector.multi_reduction <add>, %6, %cst_7 [1] : vector<128x128xf32> to vector<128xf32>
    %8 = vector.shape_cast %7 : vector<128xf32> to vector<128x1xf32>
    %c0_8 = arith.constant 0 : index
    %c0_9 = arith.constant 0 : index
    %9 = vector.load %arg6[%c0_8, %c0_9] : memref<128x1xf32, #tpu.memory_space<vmem>>, vector<128x1xf32>
    tpu.vector_store %arg6[%c0_8, %c0_9], %8 {strides = array<i32>} : memref<128x1xf32, #tpu.memory_space<vmem>>, vector<128x1xf32>,
    %c0_10 = arith.constant 0 : index
    %c0_11 = arith.constant 0 : index
    %10 = vector.load %arg4[%c0_10, %c0_11] : memref<1x128xf32, #tpu.memory_space<vmem>>, vector<1x128xf32>
    %cst_12 = arith.constant dense<0.000000e+00> : vector<1x128xf32>
    %11 = tpu.matmul %10, %2, %cst_12 {dimension_numbers = #tpu.dot_dimension_numbers<[1], [1], [0], [0], [0, 0, 1, 0], [], []>} : vector<1x128xf32>, vector<128x128xf32>, vector<1x128xf32> -> vector<1x128xf32>
    %c0_13 = arith.constant 0 : index
    %c0_14 = arith.constant 0 : index
    %12 = vector.load %arg7[%c0_13, %c0_14] : memref<1x128xf32, #tpu.memory_space<vmem>>, vector<1x128xf32>
    tpu.vector_store %arg7[%c0_13, %c0_14], %11 {strides = array<i32>} : memref<1x128xf32, #tpu.memory_space<vmem>>, vector<1x128xf32>,
    return
  }
  func.func @transform_0(%arg0: i32) -> (i32, i32) {
    %c0_i32 = arith.constant 0 : i32
    %c0_i32_0 = arith.constant 0 : i32
    return %arg0, %c0_i32 : i32, i32
  }
  func.func @transform_1(%arg0: i32) -> (i32, i32) {
    %c0_i32 = arith.constant 0 : i32
    %c0_i32_0 = arith.constant 0 : i32
    %c0_i32_1 = arith.constant 0 : i32
    return %c0_i32, %c0_i32_0 : i32, i32
  }
  func.func @transform_2(%arg0: i32) -> (i32, i32) {
    %c0_i32 = arith.constant 0 : i32
    %c0_i32_0 = arith.constant 0 : i32
    %c0_i32_1 = arith.constant 0 : i32
    return %c0_i32, %c0_i32_0 : i32, i32
  }
  func.func @transform_3(%arg0: i32) -> (i32, i32) {
    %c0_i32 = arith.constant 0 : i32
    %c0_i32_0 = arith.constant 0 : i32
    %c0_i32_1 = arith.constant 0 : i32
    return %c0_i32, %c0_i32_0 : i32, i32
  }
  func.func @transform_4(%arg0: i32) -> (i32, i32) {
    %c0_i32 = arith.constant 0 : i32
    %c0_i32_0 = arith.constant 0 : i32
    return %arg0, %c0_i32 : i32, i32
  }
  func.func @transform_5(%arg0: i32) -> (i32, i32) {
    %c0_i32 = arith.constant 0 : i32
    %c0_i32_0 = arith.constant 0 : i32
    return %arg0, %c0_i32 : i32, i32
  }
  func.func @transform_6(%arg0: i32) -> (i32, i32) {
    %c0_i32 = arith.constant 0 : i32
    %c0_i32_0 = arith.constant 0 : i32
    return %c0_i32, %arg0 : i32, i32
  }
}

</mosaic_0001>

<bundles_post_ra>
// kernel: tpu_custom_call.1
= control target key start
LH: loop header
LB: loop body
LE: loop exit
PB: predicated region body
PF: predicated region fallthrough
CT: control target
= control target key end

     0   :  { %12 = vsyncpa [#allocation3], 0  ;;  %vm40_vm0 = vcmask 130048   ;;  %s858_s0 = inlined_call_operand.vmem [shape: f32[128,16], index: 0, kind: input, shape index: {}]   ;;  %s859_s1 = inlined_call_operand.vmem [shape: f32[16,128], index: 1, kind: input, shape index: {}]   ;;  %s860_s2 = inlined_call_operand.vmem [shape: f32[1,128], index: 2, kind: input, shape index: {}]   ;;  %s861_s3 = inlined_call_operand.vmem [shape: f32[1,128], index: 3, kind: input, shape index: {}]   ;;  %s862_s4 = inlined_call_operand.hbm [shape: f32[128,128], index: 4, kind: output, shape index: {0}]   ;;  %s863_s5 = inlined_call_operand.vmem [shape: f32[128,1], index: 5, kind: output, shape index: {1}]   ;;  %s864_s6 = inlined_call_operand.hbm [shape: f32[1,128], index: 6, kind: output, shape index: {2}]  }
   0x1   :  { %v38_v0 = vld [vmem:[%s859_s1] sm:$0xff]  ;;  %v39_v1 = vld [vmem:[%s859_s1 + $0x8] sm:$0xff]  ;;  %v24_v5 = vld [vmem:[%s858_s0 + $0x10] sm:$0xff] }
   0x2   :  { %v22_v2 = vld [vmem:[%s858_s0] sm:$0xff]  ;;  %v543_v3 = vpack.c.bf16 %v39_v1, %v38_v0  ;;  %v23_v4 = vld [vmem:[%s858_s0 + $0x8] sm:$0xff] }
   0x3   :  { %484 = vmatprep.mubr.msk.f32.mxu0 %vm40_vm0, %v22_v2 }
   0x4   :  { %544 = vmatprep.subr.bf16.mxu0 %v543_v3 }
   0x5   :  { %546 = vmatpush3.bf16.msra.mxu0 %v543_v3 }
   0x6   :  { %13 = vsyncpa [#allocation5], 0  ;;  %v25_v6 = vld [vmem:[%s858_s0 + $0x18] sm:$0xff]  ;;  %v26_v7 = vld [vmem:[%s858_s0 + $0x20] sm:$0xff]  ;;  %v626_v19 = vmov 0.0|0.0   ;;  %vm627_vm1 = vmmov 0  }
   0x7   :  { %v27_v8 = vld [vmem:[%s858_s0 + $0x28] sm:$0xff]  ;;  %v28_v9 = vld [vmem:[%s858_s0 + $0x30] sm:$0xff]  ;;  %v29_v10 = vld [vmem:[%s858_s0 + $0x38] sm:$0xff]  ;;  %547 = vmatprep.subr.bf16.mxu1 %v626_v19  ;;  %v628_v20 = vmov 0.0   ;;  %vm305_vm2 = vcmask 7168  }
   0x8   :  { %485 = vmatmul.mubr.msk.f32.vlgmr.msra.gmra.mrb[0].mxu0 %vm40_vm0, %v23_v4  ;;  %v30_v11 = vld [vmem:[%s858_s0 + $0x40] sm:$0xff]  ;;  %v31_v12 = vld [vmem:[%s858_s0 + $0x48] sm:$0xff]  ;;  %v32_v13 = vld [vmem:[%s858_s0 + $0x50] sm:$0xff]  ;;  %540 = vmatprep.mubr.msk.f32.mxu1 %vm627_vm1, %v628_v20 }
   0x9   :  { %487 = vmatprep.mubr.msk.f32.mxu0 %vm40_vm0, %v24_v5  ;;  %v33_v14 = vld [vmem:[%s858_s0 + $0x58] sm:$0xff]  ;;  %v34_v15 = vld [vmem:[%s858_s0 + $0x60] sm:$0xff]  ;;  %v35_v16 = vld [vmem:[%s858_s0 + $0x68] sm:$0xff] }
   0xa   :  { %v36_v17 = vld [vmem:[%s858_s0 + $0x70] sm:$0xff]  ;;  %v37_v18 = vld [vmem:[%s858_s0 + $0x78] sm:$0xff]  ;;  %v742_v21 = vld [vmem:[%s860_s2] ss:$0 sm:$0xff] }
   0xb   :  { %v322_v62 = vld [vmem:[%s861_s3] sm:$0x1]  ;;  %s629_s3 = smov [#allocation2]  }
   0xc   :  { %488 = vmatmul.mubr.msk.f32.gmra.mrb[2].mxu0 %vm40_vm0, %v25_v6  ;;  %s399_s15 = sshll.u32 %s629_s3, 4  ;;  %s400_s15 = int_to_ptr.vmem [resolvable:$true] %s399_s15 }
   0xd   :  { %490 = vmatprep.mubr.msk.f32.mxu0 %vm40_vm0, %v26_v7  ;;  %s578_s18 = scalar_lea.vmem %s400_s15, 2048  ;;  %p583_p1 = scmp.lt.s32.totalorder %s400_s15, %s400_s15 }
   0xe   :  { %p579_p0 = scmp.ne.s32.totalorder %s400_s15, %s578_s18  ;;  %p584_p2 = scmp.lt.s32.totalorder %s578_s18, %s578_s18 }
  0x10   :  { %491 = vmatmul.mubr.msk.f32.gmra.mrb[4].mxu0 %vm40_vm0, %v27_v8  ;;  %p585_p3 = por %p584_p2, %p583_p1 }
  0x11   :  { %493 = vmatprep.mubr.msk.f32.mxu0 %vm40_vm0, %v28_v9 }
  0x12   :  { %p586_p4 = pnand %p585_p3, %p579_p0 }
  0x14   :  { %494 = vmatmul.mubr.msk.f32.gmra.mrb[6].mxu0 %vm40_vm0, %v29_v10 }
  0x15   :  { %496 = vmatprep.mubr.msk.f32.mxu0 %vm40_vm0, %v30_v11 }
  0x18   :  { %497 = vmatmul.mubr.msk.f32.gmra.mrb[8].mxu0 %vm40_vm0, %v31_v12 }
  0x19   :  { %499 = vmatprep.mubr.msk.f32.mxu0 %vm40_vm0, %v32_v13 }
  0x1c   :  { %500 = vmatmul.mubr.msk.f32.gmra.mrb[10].mxu0 %vm40_vm0, %v33_v14 }
  0x1d   :  { %502 = vmatprep.mubr.msk.f32.mxu0 %vm40_vm0, %v34_v15 }
  0x20   :  { %503 = vmatmul.mubr.msk.f32.gmra.mrb[12].mxu0 %vm40_vm0, %v35_v16 }
  0x21   :  { %505 = vmatprep.mubr.msk.f32.mxu0 %vm40_vm0, %v36_v17 }
  0x24   :  { %506 = vmatmul.mubr.msk.f32.gmra.mrb[14].mxu0 %vm40_vm0, %v37_v18 }
  0xdb   :  { %v486_v22 = vpop.f32.mrb[0].mxu0 }
  0xdc   :  { %235 = vst [vmem:[#allocation2 + $0x8] sm:$0xff] %v486_v22  ;;  %v155_v23 = vpop.f32.mrb[1].mxu0  ;;  %v258_v24 = vmul.f32 %v486_v22, %v742_v21 }
  0xdd   :  { %234 = vst [vmem:[#allocation2] sm:$0xff] %v155_v23  ;;  %v548_v25 = vpack.c.bf16 %v486_v22, %v155_v23  ;;  %v257_v27 = vmul.f32 %v742_v21, %v155_v23 }
  0xde   :  { %275 = vadd.xlane.f32.xlu0 %v258_v24 }
  0xdf   :  { %v489_v26 = vpop.f32.mrb[2].mxu0  ;;  %549 = vmatpush3.bf16.xpose.msra.mxu1 %v548_v25 }
  0xe0   :  { %237 = vst [vmem:[#allocation2 + $0x18] sm:$0xff] %v489_v26  ;;  %v260_v28 = vmul.f32 %v489_v26, %v742_v21  ;;  %v165_v29 = vpop.f32.mrb[3].mxu0  ;;  %550 = vmatprep.subr.bf16.mxu1 %v626_v19 }
  0xe1   :  { %236 = vst [vmem:[#allocation2 + $0x10] sm:$0xff] %v165_v29  ;;  %v551_v30 = vpack.c.bf16 %v489_v26, %v165_v29  ;;  %v259_v31 = vmul.f32 %v742_v21, %v165_v29 }
  0xe2   :  { %273 = vadd.xlane.f32.xlu0 %v257_v27  ;;  %279 = vadd.xlane.f32.xlu1 %v260_v28 }
  0xe3   :  { %v492_v32 = vpop.f32.mrb[4].mxu0 }
  0xe4   :  { %239 = vst [vmem:[#allocation2 + $0x28] sm:$0xff] %v492_v32  ;;  %v175_v33 = vpop.f32.mrb[5].mxu0  ;;  %v262_v36 = vmul.f32 %v492_v32, %v742_v21 }
  0xe5   :  { %238 = vst [vmem:[#allocation2 + $0x20] sm:$0xff] %v175_v33  ;;  %v554_v34 = vpack.c.bf16 %v492_v32, %v175_v33  ;;  %v261_v35 = vmul.f32 %v742_v21, %v175_v33 }
  0xe6   :  { %277 = vadd.xlane.f32.xlu1 %v259_v31 }
  0xe7   :  { %552 = vmatpush3.bf16.xpose.msra.mxu1 %v551_v30  ;;  %281 = vadd.xlane.f32.xlu0 %v261_v35  ;;  %v495_v37 = vpop.f32.mrb[6].mxu0 }
  0xe8   :  { %553 = vmatprep.subr.bf16.mxu1 %v626_v19  ;;  %241 = vst [vmem:[#allocation2 + $0x38] sm:$0xff] %v495_v37  ;;  %v185_v38 = vpop.f32.mrb[7].mxu0  ;;  %v264_v41 = vmul.f32 %v495_v37, %v742_v21 }
  0xe9   :  { %240 = vst [vmem:[#allocation2 + $0x30] sm:$0xff] %v185_v38  ;;  %v557_v39 = vpack.c.bf16 %v495_v37, %v185_v38  ;;  %v263_v40 = vmul.f32 %v742_v21, %v185_v38 }
  0xea   :  { %283 = vadd.xlane.f32.xlu1 %v262_v36 }
  0xeb   :  { %285 = vadd.xlane.f32.xlu0 %v263_v40  ;;  %v498_v42 = vpop.f32.mrb[8].mxu0 }
  0xec   :  { %243 = vst [vmem:[#allocation2 + $0x48] sm:$0xff] %v498_v42  ;;  %v195_v43 = vpop.f32.mrb[9].mxu0  ;;  %v266_v46 = vmul.f32 %v498_v42, %v742_v21 }
  0xed   :  { %242 = vst [vmem:[#allocation2 + $0x40] sm:$0xff] %v195_v43  ;;  %v560_v44 = vpack.c.bf16 %v498_v42, %v195_v43  ;;  %v265_v45 = vmul.f32 %v742_v21, %v195_v43 }
  0xee   :  { %287 = vadd.xlane.f32.xlu1 %v264_v41 }
  0xef   :  { %555 = vmatpush3.bf16.xpose.msra.mxu1 %v554_v34  ;;  %289 = vadd.xlane.f32.xlu0 %v265_v45  ;;  %v501_v47 = vpop.f32.mrb[10].mxu0 }
  0xf0   :  { %556 = vmatprep.subr.bf16.mxu1 %v626_v19  ;;  %245 = vst [vmem:[#allocation2 + $0x58] sm:$0xff] %v501_v47  ;;  %v205_v48 = vpop.f32.mrb[11].mxu0  ;;  %v268_v51 = vmul.f32 %v501_v47, %v742_v21 }
  0xf1   :  { %244 = vst [vmem:[#allocation2 + $0x50] sm:$0xff] %v205_v48  ;;  %v563_v49 = vpack.c.bf16 %v501_v47, %v205_v48  ;;  %v267_v50 = vmul.f32 %v742_v21, %v205_v48 }
  0xf2   :  { %291 = vadd.xlane.f32.xlu1 %v266_v46 }
  0xf3   :  { %293 = vadd.xlane.f32.xlu0 %v267_v50  ;;  %v504_v52 = vpop.f32.mrb[12].mxu0 }
  0xf4   :  { %247 = vst [vmem:[#allocation2 + $0x68] sm:$0xff] %v504_v52  ;;  %v215_v53 = vpop.f32.mrb[13].mxu0  ;;  %v270_v56 = vmul.f32 %v504_v52, %v742_v21 }
  0xf5   :  { %246 = vst [vmem:[#allocation2 + $0x60] sm:$0xff] %v215_v53  ;;  %v566_v54 = vpack.c.bf16 %v504_v52, %v215_v53  ;;  %v269_v55 = vmul.f32 %v742_v21, %v215_v53 }
  0xf6   :  { %295 = vadd.xlane.f32.xlu1 %v268_v51 }
  0xf7   :  { %558 = vmatpush3.bf16.xpose.msra.mxu1 %v557_v39  ;;  %297 = vadd.xlane.f32.xlu0 %v269_v55  ;;  %v507_v57 = vpop.f32.mrb[14].mxu0 }
  0xf8   :  { %559 = vmatprep.subr.bf16.mxu1 %v626_v19  ;;  %249 = vst [vmem:[#allocation2 + $0x78] sm:$0xff] %v507_v57  ;;  %v225_v58 = vpop.f32.mrb[15].mxu0  ;;  %v272_v61 = vmul.f32 %v507_v57, %v742_v21 }
  0xf9   :  { %248 = vst [vmem:[#allocation2 + $0x70] sm:$0xff] %v225_v58  ;;  %v569_v59 = vpack.c.bf16 %v507_v57, %v225_v58  ;;  %v271_v60 = vmul.f32 %v742_v21, %v225_v58 }
  0xfa   :  { %299 = vadd.xlane.f32.xlu1 %v270_v56 }
  0xfb   :  { %301 = vadd.xlane.f32.xlu0 %v271_v60 }
  0xfe   :  { %303 = vadd.xlane.f32.xlu1 %v272_v61 }
  0xff   :  { %561 = vmatpush3.bf16.xpose.msra.mxu1 %v560_v44 }
 0x100   :  { %562 = vmatprep.subr.bf16.mxu1 %v626_v19 }
 0x107   :  { %564 = vmatpush3.bf16.xpose.msra.mxu1 %v563_v49 }
 0x108   :  { %565 = vmatprep.subr.bf16.mxu1 %v626_v19 }
 0x10f   :  { %567 = vmatpush3.bf16.xpose.msra.mxu1 %v566_v54 }
 0x110   :  { %568 = vmatprep.subr.bf16.mxu1 %v626_v19 }
 0x117   :  { %570 = vmatpush3.bf16.xpose.msra.mxu1 %v569_v59 }
 0x11e   :  { %541 = vmatmul.mubr.f32.vlgmr.msra.gmra.mrb[0].mxu1 %v322_v62 }
 0x16b   :  { %v276_v63 = vpop.xlane.xlu0 %275 }
 0x16c   :  { %307 = vst.msk [vmem:[%s863_s5 + $0x8] sm:$0xff] %vm305_vm2, %v276_v63 }
 0x16f   :  { %v274_v0 = vpop.xlane.xlu0 %273  ;;  %v280_v1 = vpop.xlane.xlu1 %279 }
 0x170   :  { %306 = vst.msk [vmem:[%s863_s5] sm:$0xff] %vm305_vm2, %v274_v0  ;;  %309 = vst.msk [vmem:[%s863_s5 + $0x18] sm:$0xff] %vm305_vm2, %v280_v1 }
 0x173   :  { %v278_v2 = vpop.xlane.xlu1 %277 }
 0x174   :  { %308 = vst.msk [vmem:[%s863_s5 + $0x10] sm:$0xff] %vm305_vm2, %v278_v2  ;;  %v282_v3 = vpop.xlane.xlu0 %281 }
 0x175   :  { %589 = shalt.err (!%p586_p4)
}
 0x176   :  { %s590_s21 = scalar_lea.hbm %s862_s4, 2048 }
 0x177   :  { %p591_p5 = scmp.ne.s32.totalorder %s862_s4, %s590_s21  ;;  %p594_p6 = scmp.lt.u32.totalorder %s590_s21, %s862_s4 }
 0x179   :  { %p596_p7 = pnand %p594_p6, %p591_p5 }
 0x17b   :  { %599 = shalt.err (!%p596_p7)
}
 0x17c   :  { %s630_s26 = smov 128   ;;  %s631_s27 = smov 8   ;;  %310 = vst.msk [vmem:[%s863_s5 + $0x20] sm:$0xff] %vm305_vm2, %v282_v3  ;;  %v284_v4 = vpop.xlane.xlu1 %283  ;;  %v286_v5 = vpop.xlane.xlu0 %285 }
 0x17d   :  { %405 = dma.vmem_to_hbm [thread:$0]  %s400_s15, 2048, %s862_s4, [#allocation3], %s630_s26, %s630_s26, %s631_s27  }
 0x17e   :  { %311 = vst.msk [vmem:[%s863_s5 + $0x28] sm:$0xff] %vm305_vm2, %v284_v4  ;;  %312 = vst.msk [vmem:[%s863_s5 + $0x30] sm:$0xff] %vm305_vm2, %v286_v5  ;;  %s632_s25 = smov [#allocation4]  }
 0x17f   :  { %s414_s26 = sshll.u32 %s632_s25, 4  ;;  %s415_s26 = int_to_ptr.vmem [resolvable:$true] %s414_s26 }
 0x180   :  { %v288_v6 = vpop.xlane.xlu1 %287  ;;  %v290_v7 = vpop.xlane.xlu0 %289  ;;  %s600_s27 = scalar_lea.vmem %s415_s26, 16  ;;  %s604_s28 = scalar_lea.vmem %s415_s26, 32 }
 0x181   :  { %313 = vst.msk [vmem:[%s863_s5 + $0x38] sm:$0xff] %vm305_vm2, %v288_v6  ;;  %314 = vst.msk [vmem:[%s863_s5 + $0x40] sm:$0xff] %vm305_vm2, %v290_v7  ;;  %p601_p8 = scmp.ne.s32.totalorder %s415_s26, %s600_s27  ;;  %p605_p9 = scmp.lt.s32.totalorder %s415_s26, %s415_s26 }
 0x182   :  { %p606_p10 = scmp.lt.s32.totalorder %s604_s28, %s600_s27 }
 0x184   :  { %v292_v8 = vpop.xlane.xlu1 %291  ;;  %v294_v9 = vpop.xlane.xlu0 %293  ;;  %p607_p11 = por %p606_p10, %p605_p9 }
 0x185   :  { %315 = vst.msk [vmem:[%s863_s5 + $0x48] sm:$0xff] %vm305_vm2, %v292_v8  ;;  %316 = vst.msk [vmem:[%s863_s5 + $0x50] sm:$0xff] %vm305_vm2, %v294_v9 }
 0x186   :  { %p608_p12 = pnand %p607_p11, %p601_p8 }
 0x188   :  { %v296_v10 = vpop.xlane.xlu1 %295  ;;  %v298_v11 = vpop.xlane.xlu0 %297 }
 0x189   :  { %317 = vst.msk [vmem:[%s863_s5 + $0x58] sm:$0xff] %vm305_vm2, %v296_v10  ;;  %318 = vst.msk [vmem:[%s863_s5 + $0x60] sm:$0xff] %vm305_vm2, %v298_v11 }
 0x18c   :  { %v300_v12 = vpop.xlane.xlu1 %299  ;;  %v302_v13 = vpop.xlane.xlu0 %301 }
 0x18d   :  { %319 = vst.msk [vmem:[%s863_s5 + $0x68] sm:$0xff] %vm305_vm2, %v300_v12  ;;  %320 = vst.msk [vmem:[%s863_s5 + $0x70] sm:$0xff] %vm305_vm2, %v302_v13 }
 0x190   :  { %v304_v14 = vpop.xlane.xlu1 %303 }
 0x191   :  { %321 = vst.msk [vmem:[%s863_s5 + $0x78] sm:$0xff] %vm305_vm2, %v304_v14 }
 0x1f1   :  { %v389_v15 = vpop.f32.mrb[0].mxu1 }
 0x1f2   :  { %393 = vst [vmem:[#allocation4] sm:$0x1] %v389_v15  ;;  %v542_v16 = vpop.f32.mrb[1].mxu1 }
 0x1f3   :  { %611 = shalt.err (!%p608_p12)
}
 0x1f4   :  { %s612_s1 = scalar_lea.hbm %s864_s6, 16 }
 0x1f5   :  { %p613_p13 = scmp.ne.s32.totalorder %s864_s6, %s612_s1  ;;  %p616_p0 = scmp.lt.u32.totalorder %s612_s1, %s864_s6 }
 0x1f7   :  { %p618_p1 = pnand %p616_p0, %p613_p13 }
 0x1f9   :  { %621 = shalt.err (!%p618_p1)
}
 0x1fa   :  { %417 = dma.vmem_to_hbm [thread:$0]  %s415_s26, 16, %s864_s6, [#allocation5]  }
 0x1fb   :  { %622 = dma.done.wait [#allocation3], 2048  }
 0x1fc   :  { %623 = vsyncadd [#allocation3], 4294965248 }
 0x1fd   :  { %624 = dma.done.wait [#allocation5], 16  }
 0x1fe   :  { %625 = vsyncadd [#allocation5], 4294967280 }
 0x1ff   :  { %426 = vsyncpa [#allocation3], 1 }
 0x200   :  { %427 = vsyncpa [#allocation5], 1 }

</bundles_post_ra>
